<compile_context>
chip_gen: v6e
topology: v6e:2x2x1
jax: 0.10.0
libtpu: 0.0.40
codegen_flags: <defaults>
</compile_context>

<pallas_src>
import functools

import jax
import jax.numpy as jnp
import numpy as np
from jax.experimental import pallas as pl
from jax.experimental.pallas import tpu as pltpu  # noqa: F401  (TPU backend assumed)


def encoder_kernel(x_ref, wqkv_ref, wo_ref, w1_ref, w2_ref, bias_ref, mask_ref,
                   out_ref, attn_ref,
                   *, n_h, d_m, d_h, eps, apply_ln):
    # NOTE: ScaledDotProductAttention is constructed with d_m -> temper = sqrt(d_m)
    inv_temper = 1.0 / (d_m ** 0.5)

    x = x_ref[...]                                    # (BL, d_m) f32
    BL = x.shape[0]

    # packed bias/gain buffer: rows = [b_o, g1, be1, bc1, bc2, g2, be2]
    bp = bias_ref[...]                                # (7, max(d_m, d_h)) f32
    b_o = bp[0:1, :d_m]
    g1  = bp[1:2, :d_m]
    be1 = bp[2:3, :d_m]
    bc1 = bp[3:4, :d_h]
    bc2 = bp[4:5, :d_m]
    g2  = bp[5:6, :d_m]
    be2 = bp[6:7, :d_m]

    def layer_norm(a, g, beta):
        if not apply_ln:                              # torch: if a.size(1) == 1: return a
            return a
        mu = jnp.mean(a, axis=-1, keepdims=True)
        diff = a - mu
        var = jnp.sum(diff * diff, axis=-1, keepdims=True) / (d_m - 1)   # unbiased (torch.std)
        sigma = jnp.sqrt(var)
        return diff / (sigma + eps) * g + beta        # exact divide (EUP is idle anyway)

    # ---- head-batched QKV projections: 3 batched bf16 MXU ops, tile-aligned heads ----
    xb = jnp.broadcast_to(x.astype(jnp.bfloat16)[None], (n_h, BL, d_m))
    wq = wqkv_ref[0]                                  # (n_h, d_m, d_max) bf16
    wk = wqkv_ref[1]
    wv = wqkv_ref[2]
    qs = jnp.einsum('hld,hdk->hlk', xb, wq, preferred_element_type=jnp.float32)
    ks = jnp.einsum('hld,hdk->hlk', xb, wk, preferred_element_type=jnp.float32)
    vs = jnp.einsum('hld,hdv->hlv', xb, wv, preferred_element_type=jnp.float32)

    # ---- scores: K-transpose folded into the contraction; additive block-diag mask ----
    s = jnp.einsum('hqd,hkd->hqk',
                   qs.astype(jnp.bfloat16), ks.astype(jnp.bfloat16),
                   preferred_element_type=jnp.float32)       # (n_h, BL, BL) f32
    s = s * inv_temper + mask_ref[...]                # (BL, BL) bias broadcasts over heads

    s = s - jnp.max(s, axis=-1, keepdims=True)
    p = jnp.exp(s)
    p = p / jnp.sum(p, axis=-1, keepdims=True)

    attn_ref[...] = p                                 # single head-major, tile-aligned store

    # ---- attention output + per-head accumulation through W_o row-blocks ----
    o = jnp.einsum('hqk,hkv->hqv',
                   p.astype(jnp.bfloat16), vs.astype(jnp.bfloat16),
                   preferred_element_type=jnp.float32)       # (n_h, BL, d_max)

    acc = jnp.zeros((BL, d_m), jnp.float32)
    for h in range(n_h):                              # small static -> unrolled, one accumulator
        acc = acc + jnp.dot(o[h].astype(jnp.bfloat16), wo_ref[h],
                            preferred_element_type=jnp.float32)

    proj = acc + b_o                                  # dropout == identity
    mha = layer_norm(proj + x, g1, be1)

    # ---- position-wise feed-forward (1x1 conv == per-row linear) ----
    hdn = jnp.maximum(
        jnp.dot(mha.astype(jnp.bfloat16), w1_ref[...],
                preferred_element_type=jnp.float32) + bc1, 0.0)
    ffn = jnp.dot(hdn.astype(jnp.bfloat16), w2_ref[...],
                  preferred_element_type=jnp.float32) + bc2
    out_ref[...] = layer_norm(ffn + mha, g2, be2)


def _full_spec(a):
    zeros = (0,) * a.ndim
    return pl.BlockSpec(a.shape, lambda: zeros)


def encoder_forward(x, p):
    b, L, d_m = x.shape
    n_h, _, d_k = p["W_q"].shape
    d_v = p["W_v"].shape[2]
    d_h = p["W1"].shape[1]
    BL = b * L
    d_max = max(d_k, d_v)

    def pad_last(w, to):
        pad = to - w.shape[-1]
        if pad == 0:
            return w
        return jnp.pad(w, ((0, 0),) * (w.ndim - 1) + ((0, pad),))

    # Stacked head-batched QKV weights (zero-padded to a common head width) -> 1 DMA,
    # bf16 MXU operands.
    w_qkv = jnp.stack([pad_last(p["W_q"], d_max),
                       pad_last(p["W_k"], d_max),
                       pad_last(p["W_v"], d_max)], axis=0).astype(jnp.bfloat16)

    # W_o as per-head (d_max, d_m) row-blocks (zero rows for padding are harmless).
    wo3 = p["W_o"].reshape(n_h, d_v, d_m)
    if d_v < d_max:
        wo3 = jnp.pad(wo3, ((0, 0), (0, d_max - d_v), (0, 0)))
    wo3 = wo3.astype(jnp.bfloat16)

    w1 = p["W1"].astype(jnp.bfloat16)
    w2 = p["W2"].astype(jnp.bfloat16)

    # Pack the seven tiny bias/gain vectors into one buffer -> 1 DMA instead of 7.
    d_hb = max(d_m, d_h)

    def row(v):
        return pad_last(v.reshape(1, -1), d_hb)

    bias_pack = jnp.concatenate(
        [row(p["b_o"]), row(p["g1"]), row(p["be1"]), row(p["bc1"]),
         row(p["bc2"]), row(p["g2"]), row(p["be2"])], axis=0).astype(jnp.float32)

    # Block-diagonal additive mask bias keeps the B batches independent inside the
    # fused (BL x BL) score matmul.
    batch_id = jnp.arange(BL, dtype=jnp.int32) // L
    mask_bias = jnp.where(batch_id[:, None] == batch_id[None, :],
                          0.0, -1e30).astype(jnp.float32)

    x2d = x.reshape(BL, d_m).astype(jnp.float32)

    kernel = functools.partial(
        encoder_kernel, n_h=n_h, d_m=d_m, d_h=d_h, eps=1e-3, apply_ln=(L != 1))

    args = (x2d, w_qkv, wo3, w1, w2, bias_pack, mask_bias)

    out2d, attn_raw = pl.pallas_call(
        kernel,
        in_specs=[_full_spec(a) for a in args],
        out_specs=[pl.BlockSpec((BL, d_m), lambda: (0, 0)),
                   pl.BlockSpec((n_h, BL, BL), lambda: (0, 0, 0))],
        out_shape=[jax.ShapeDtypeStruct((BL, d_m), jnp.float32),
                   jax.ShapeDtypeStruct((n_h, BL, BL), jnp.float32)],
    )(*args)

    out = out2d.reshape(b, L, d_m)

    # attn_raw is head-major (n_h, b*L, b*L); keep only the per-batch diagonal blocks
    # and produce torch's (n_h*b, L, L) head-major ordering (cheap wrapper plumbing).
    attn5 = attn_raw.reshape(n_h, b, L, b, L)
    idx = jnp.arange(b)
    attn_diag = attn5[:, idx, :, idx, :]              # (b, n_h, L, L)
    attn_torch = jnp.transpose(attn_diag, (1, 0, 2, 3)).reshape(n_h * b, L, L)
    return out, attn_torch


def reference_forward(x, p):
    """Plain-JAX f32 reference mirroring the torch forward pass."""
    b, L, d_m = x.shape
    n_h = p["W_q"].shape[0]
    qs = jnp.einsum('bld,hdk->hblk', x, p["W_q"])
    ks = jnp.einsum('bld,hdk->hblk', x, p["W_k"])
    vs = jnp.einsum('bld,hdv->hblv', x, p["W_v"])     # torch uses k-input for vs; q=k=v here
    s = jnp.einsum('hbqd,hbkd->hbqk', qs, ks) / (d_m ** 0.5)
    attn = jax.nn.softmax(s, axis=-1)
    o = jnp.einsum('hbqk,hbkv->hbqv', attn, vs)
    concat = jnp.transpose(o, (1, 2, 0, 3)).reshape(b, L, -1)
    proj = concat @ p["W_o"] + p["b_o"]

    def ln(a, g, be):
        if L == 1:
            return a
        mu = a.mean(-1, keepdims=True)
        sig = jnp.sqrt(((a - mu) ** 2).sum(-1, keepdims=True) / (d_m - 1))
        return (a - mu) / (sig + 1e-3) * g + be

    mha = ln(proj + x, p["g1"], p["be1"])
    h = jnp.maximum(mha @ p["W1"] + p["bc1"], 0.0)
    ffn = h @ p["W2"] + p["bc2"]
    out = ln(ffn + mha, p["g2"], p["be2"])
    attn_t = attn.reshape(n_h * b, L, L)
    return out, attn_t


def init_params(key, n_h, d_m, d_h, d_k, d_v):
    ks = jax.random.split(key, 8)

    def xavier(k, shape, fan_in, fan_out):
        std = (2.0 / (fan_in + fan_out)) ** 0.5
        return std * jax.random.normal(k, shape, dtype=jnp.float32)

    return {
        "W_q": xavier(ks[0], (n_h, d_m, d_k), d_m, d_k),
        "W_k": xavier(ks[1], (n_h, d_m, d_k), d_m, d_k),
        "W_v": xavier(ks[2], (n_h, d_m, d_v), d_m, d_v),
        "W_o": xavier(ks[3], (n_h * d_v, d_m), n_h * d_v, d_m),
        "b_o": 0.01 * jax.random.normal(ks[4], (1, d_m), dtype=jnp.float32),
        "g1": jnp.ones((1, d_m), jnp.float32),
        "be1": jnp.zeros((1, d_m), jnp.float32),
        "W1": xavier(ks[5], (d_m, d_h), d_m, d_h),
        "bc1": 0.01 * jax.random.normal(ks[6], (1, d_h), dtype=jnp.float32),
        "W2": xavier(ks[7], (d_h, d_m), d_h, d_m),
        "bc2": jnp.zeros((1, d_m), jnp.float32),
        "g2": jnp.ones((1, d_m), jnp.float32),
        "be2": jnp.zeros((1, d_m), jnp.float32),
    }


if __name__ == "__main__":
    # Encoder(n_h=4, d_m=32, d_h=64, d_k=16, d_v=16, dropout=0.0)
    B, L, N_H, D_M, D_H, D_K, D_V = 2, 8, 4, 32, 64, 16, 16

    root = jax.random.PRNGKey(0)
    kx, kp = jax.random.split(root)
    x = jax.random.normal(kx, (B, L, D_M), dtype=jnp.float32)
    params = init_params(kp, N_H, D_M, D_H, D_K, D_V)

    out, attn = encoder_forward(x, params)
    jax.block_until_ready((out, attn))

    ref_out, ref_attn = reference_forward(x, params)
    # bf16 MXU operands (f32 accumulation) -> slightly looser tolerance vs the f32 reference.
    np.testing.assert_allclose(np.asarray(out), np.asarray(ref_out), rtol=3e-2, atol=3e-2)
    np.testing.assert_allclose(np.asarray(attn), np.asarray(ref_attn), rtol=3e-2, atol=3e-2)

    assert out.shape == (B, L, D_M) and attn.shape == (N_H * B, L, L)
    print("KERNEL_OK")
</pallas_src>

<mosaic_0001>
module attributes {stable_mosaic.version = 11 : i64} {
  func.func @encoder_kernel(%arg0: memref<16x32xf32, #tpu.memory_space<vmem>>, %arg1: memref<3x4x32x16xbf16, #tpu.memory_space<vmem>>, %arg2: memref<4x16x32xbf16, #tpu.memory_space<vmem>>, %arg3: memref<32x64xbf16, #tpu.memory_space<vmem>>, %arg4: memref<64x32xbf16, #tpu.memory_space<vmem>>, %arg5: memref<7x64xf32, #tpu.memory_space<vmem>>, %arg6: memref<16x16xf32, #tpu.memory_space<vmem>>, %arg7: memref<16x32xf32, #tpu.memory_space<vmem>>, %arg8: memref<4x16x16xf32, #tpu.memory_space<vmem>>) attributes {dimension_semantics = [], scalar_prefetch = 0 : i64, scratch_operands = 0 : i64, tpu.core_type = #tpu.core_type<tc>} {
    %c0 = arith.constant 0 : index
    %c0_0 = arith.constant 0 : index
    %0 = vector.load %arg0[%c0, %c0_0] : memref<16x32xf32, #tpu.memory_space<vmem>>, vector<16x32xf32>
    %c0_1 = arith.constant 0 : index
    %c0_2 = arith.constant 0 : index
    %1 = vector.load %arg5[%c0_1, %c0_2] : memref<7x64xf32, #tpu.memory_space<vmem>>, vector<7x64xf32>
    %2 = vector.extract_strided_slice %1 {offsets = [0, 0], sizes = [1, 32], strides = [1, 1]} : vector<7x64xf32> to vector<1x32xf32>
    %3 = vector.extract_strided_slice %1 {offsets = [1, 0], sizes = [1, 32], strides = [1, 1]} : vector<7x64xf32> to vector<1x32xf32>
    %4 = vector.extract_strided_slice %1 {offsets = [2, 0], sizes = [1, 32], strides = [1, 1]} : vector<7x64xf32> to vector<1x32xf32>
    %5 = vector.extract_strided_slice %1 {offsets = [3, 0], sizes = [1, 64], strides = [1, 1]} : vector<7x64xf32> to vector<1x64xf32>
    %6 = vector.extract_strided_slice %1 {offsets = [4, 0], sizes = [1, 32], strides = [1, 1]} : vector<7x64xf32> to vector<1x32xf32>
    %7 = vector.extract_strided_slice %1 {offsets = [5, 0], sizes = [1, 32], strides = [1, 1]} : vector<7x64xf32> to vector<1x32xf32>
    %8 = vector.extract_strided_slice %1 {offsets = [6, 0], sizes = [1, 32], strides = [1, 1]} : vector<7x64xf32> to vector<1x32xf32>
    %9 = arith.truncf %0 : vector<16x32xf32> to vector<16x32xbf16>
    %10 = vector.shape_cast %9 : vector<16x32xbf16> to vector<1x16x32xbf16>
    %11 = vector.shape_cast %10 : vector<1x16x32xbf16> to vector<1x16x32xbf16>
    %12 = vector.broadcast %11 : vector<1x16x32xbf16> to vector<4x16x32xbf16>
    %c0_3 = arith.constant 0 : index
    %c0_4 = arith.constant 0 : index
    %c0_5 = arith.constant 0 : index
    %c0_6 = arith.constant 0 : index
    %13 = vector.load %arg1[%c0_3, %c0_4, %c0_5, %c0_6] : memref<3x4x32x16xbf16, #tpu.memory_space<vmem>>, vector<1x4x32x16xbf16>
    %14 = vector.shape_cast %13 : vector<1x4x32x16xbf16> to vector<4x32x16xbf16>
    %c1 = arith.constant 1 : index
    %c0_7 = arith.constant 0 : index
    %c0_8 = arith.constant 0 : index
    %c0_9 = arith.constant 0 : index
    %15 = vector.load %arg1[%c1, %c0_7, %c0_8, %c0_9] : memref<3x4x32x16xbf16, #tpu.memory_space<vmem>>, vector<1x4x32x16xbf16>
    %16 = vector.shape_cast %15 : vector<1x4x32x16xbf16> to vector<4x32x16xbf16>
    %c2 = arith.constant 2 : index
    %c0_10 = arith.constant 0 : index
    %c0_11 = arith.constant 0 : index
    %c0_12 = arith.constant 0 : index
    %17 = vector.load %arg1[%c2, %c0_10, %c0_11, %c0_12] : memref<3x4x32x16xbf16, #tpu.memory_space<vmem>>, vector<1x4x32x16xbf16>
    %18 = vector.shape_cast %17 : vector<1x4x32x16xbf16> to vector<4x32x16xbf16>
    "tpu.trace_start"() <{level = 10 : i32, message = "hld,hdk->hlk"}> : () -> ()
    %cst = arith.constant dense<0.000000e+00> : vector<4x16x16xf32>
    %19 = tpu.matmul %12, %14, %cst {dimension_numbers = #tpu.dot_dimension_numbers<[2], [1], [1], [2], [0, 0, 0, 1, 1, 2], [0], [0]>} : vector<4x16x32xbf16>, vector<4x32x16xbf16>, vector<4x16x16xf32> -> vector<4x16x16xf32>
    %cst_13 = arith.constant dense<0.000000e+00> : vector<4x16x16xf32>
    %20 = tpu.matmul %12, %16, %cst_13 {dimension_numbers = #tpu.dot_dimension_numbers<[2], [1], [1], [2], [0, 0, 0, 1, 1, 2], [0], [0]>} : vector<4x16x32xbf16>, vector<4x32x16xbf16>, vector<4x16x16xf32> -> vector<4x16x16xf32>
    "tpu.trace_stop"() : () -> ()
    "tpu.trace_start"() <{level = 10 : i32, message = "hld,hdv->hlv"}> : () -> ()
    %cst_14 = arith.constant dense<0.000000e+00> : vector<4x16x16xf32>
    %21 = tpu.matmul %12, %18, %cst_14 {dimension_numbers = #tpu.dot_dimension_numbers<[2], [1], [1], [2], [0, 0, 0, 1, 1, 2], [0], [0]>} : vector<4x16x32xbf16>, vector<4x32x16xbf16>, vector<4x16x16xf32> -> vector<4x16x16xf32>
    "tpu.trace_stop"() : () -> ()
    %22 = arith.truncf %19 : vector<4x16x16xf32> to vector<4x16x16xbf16>
    %23 = arith.truncf %20 : vector<4x16x16xf32> to vector<4x16x16xbf16>
    "tpu.trace_start"() <{level = 10 : i32, message = "hqd,hkd->hqk"}> : () -> ()
    %cst_15 = arith.constant dense<0.000000e+00> : vector<4x16x16xf32>
    %24 = tpu.matmul %22, %23, %cst_15 {dimension_numbers = #tpu.dot_dimension_numbers<[2], [2], [1], [1], [0, 0, 0, 1, 1, 1], [0], [0]>} : vector<4x16x16xbf16>, vector<4x16x16xbf16>, vector<4x16x16xf32> -> vector<4x16x16xf32>
    "tpu.trace_stop"() : () -> ()
    %cst_16 = arith.constant 0.176776692 : f32
    %25 = vector.broadcast %cst_16 : f32 to vector<4x16x16xf32>
    %26 = arith.mulf %24, %25 : vector<4x16x16xf32>
    %c0_17 = arith.constant 0 : index
    %c0_18 = arith.constant 0 : index
    %27 = vector.load %arg6[%c0_17, %c0_18] : memref<16x16xf32, #tpu.memory_space<vmem>>, vector<16x16xf32>
    %28 = vector.shape_cast %27 : vector<16x16xf32> to vector<1x16x16xf32>
    %29 = vector.broadcast %28 : vector<1x16x16xf32> to vector<4x16x16xf32>
    %30 = arith.addf %26, %29 : vector<4x16x16xf32>
    %cst_19 = arith.constant dense<0xFF800000> : vector<4x16xf32>
    %31 = vector.multi_reduction <maximumf>, %30, %cst_19 [2] : vector<4x16x16xf32> to vector<4x16xf32>
    %32 = vector.shape_cast %31 : vector<4x16xf32> to vector<4x16x1xf32>
    %33 = vector.broadcast %32 : vector<4x16x1xf32> to vector<4x16x16xf32>
    %34 = arith.subf %30, %33 : vector<4x16x16xf32>
    %35 = math.exp %34 : vector<4x16x16xf32>
    %cst_20 = arith.constant dense<0.000000e+00> : vector<4x16xf32>
    %36 = vector.multi_reduction <add>, %35, %cst_20 [2] : vector<4x16x16xf32> to vector<4x16xf32>
    %37 = vector.shape_cast %36 : vector<4x16xf32> to vector<4x16x1xf32>
    %38 = vector.broadcast %37 : vector<4x16x1xf32> to vector<4x16x16xf32>
    %39 = arith.divf %35, %38 : vector<4x16x16xf32>
    %c0_21 = arith.constant 0 : index
    %c0_22 = arith.constant 0 : index
    %c0_23 = arith.constant 0 : index
    %40 = vector.load %arg8[%c0_21, %c0_22, %c0_23] : memref<4x16x16xf32, #tpu.memory_space<vmem>>, vector<4x16x16xf32>
    tpu.vector_store %arg8[%c0_21, %c0_22, %c0_23], %39 {strides = array<i32>} : memref<4x16x16xf32, #tpu.memory_space<vmem>>, vector<4x16x16xf32>,
    %41 = arith.truncf %39 : vector<4x16x16xf32> to vector<4x16x16xbf16>
    %42 = arith.truncf %21 : vector<4x16x16xf32> to vector<4x16x16xbf16>
    "tpu.trace_start"() <{level = 10 : i32, message = "hqk,hkv->hqv"}> : () -> ()
    %cst_24 = arith.constant dense<0.000000e+00> : vector<4x16x16xf32>
    %43 = tpu.matmul %41, %42, %cst_24 {dimension_numbers = #tpu.dot_dimension_numbers<[2], [1], [1], [2], [0, 0, 0, 1, 1, 2], [0], [0]>} : vector<4x16x16xbf16>, vector<4x16x16xbf16>, vector<4x16x16xf32> -> vector<4x16x16xf32>
    %cst_25 = arith.constant 0.000000e+00 : f32
    "tpu.trace_stop"() : () -> ()
    %44 = vector.broadcast %cst_25 : f32 to vector<16x32xf32>
    %45 = vector.extract_strided_slice %43 {offsets = [0, 0, 0], sizes = [1, 16, 16], strides = [1, 1, 1]} : vector<4x16x16xf32> to vector<1x16x16xf32>
    %46 = vector.shape_cast %45 : vector<1x16x16xf32> to vector<16x16xf32>
    %47 = arith.truncf %46 : vector<16x16xf32> to vector<16x16xbf16>
    %c0_26 = arith.constant 0 : index
    %c0_27 = arith.constant 0 : index
    %c0_28 = arith.constant 0 : index
    %48 = vector.load %arg2[%c0_26, %c0_27, %c0_28] : memref<4x16x32xbf16, #tpu.memory_space<vmem>>, vector<1x16x32xbf16>
    %49 = vector.shape_cast %48 : vector<1x16x32xbf16> to vector<16x32xbf16>
    %cst_29 = arith.constant dense<0.000000e+00> : vector<16x32xf32>
    %50 = tpu.matmul %47, %49, %cst_29 {dimension_numbers = #tpu.dot_dimension_numbers<[1], [0], [0], [1], [0, 0, 1, 1], [], []>} : vector<16x16xbf16>, vector<16x32xbf16>, vector<16x32xf32> -> vector<16x32xf32>
    %51 = arith.addf %44, %50 : vector<16x32xf32>
    %52 = vector.extract_strided_slice %43 {offsets = [1, 0, 0], sizes = [1, 16, 16], strides = [1, 1, 1]} : vector<4x16x16xf32> to vector<1x16x16xf32>
    %53 = vector.shape_cast %52 : vector<1x16x16xf32> to vector<16x16xf32>
    %54 = arith.truncf %53 : vector<16x16xf32> to vector<16x16xbf16>
    %c1_30 = arith.constant 1 : index
    %c0_31 = arith.constant 0 : index
    %c0_32 = arith.constant 0 : index
    %55 = vector.load %arg2[%c1_30, %c0_31, %c0_32] : memref<4x16x32xbf16, #tpu.memory_space<vmem>>, vector<1x16x32xbf16>
    %56 = vector.shape_cast %55 : vector<1x16x32xbf16> to vector<16x32xbf16>
    %cst_33 = arith.constant dense<0.000000e+00> : vector<16x32xf32>
    %57 = tpu.matmul %54, %56, %cst_33 {dimension_numbers = #tpu.dot_dimension_numbers<[1], [0], [0], [1], [0, 0, 1, 1], [], []>} : vector<16x16xbf16>, vector<16x32xbf16>, vector<16x32xf32> -> vector<16x32xf32>
    %58 = arith.addf %51, %57 : vector<16x32xf32>
    %59 = vector.extract_strided_slice %43 {offsets = [2, 0, 0], sizes = [1, 16, 16], strides = [1, 1, 1]} : vector<4x16x16xf32> to vector<1x16x16xf32>
    %60 = vector.shape_cast %59 : vector<1x16x16xf32> to vector<16x16xf32>
    %61 = arith.truncf %60 : vector<16x16xf32> to vector<16x16xbf16>
    %c2_34 = arith.constant 2 : index
    %c0_35 = arith.constant 0 : index
    %c0_36 = arith.constant 0 : index
    %62 = vector.load %arg2[%c2_34, %c0_35, %c0_36] : memref<4x16x32xbf16, #tpu.memory_space<vmem>>, vector<1x16x32xbf16>
    %63 = vector.shape_cast %62 : vector<1x16x32xbf16> to vector<16x32xbf16>
    %cst_37 = arith.constant dense<0.000000e+00> : vector<16x32xf32>
    %64 = tpu.matmul %61, %63, %cst_37 {dimension_numbers = #tpu.dot_dimension_numbers<[1], [0], [0], [1], [0, 0, 1, 1], [], []>} : vector<16x16xbf16>, vector<16x32xbf16>, vector<16x32xf32> -> vector<16x32xf32>
    %65 = arith.addf %58, %64 : vector<16x32xf32>
    %66 = vector.extract_strided_slice %43 {offsets = [3, 0, 0], sizes = [1, 16, 16], strides = [1, 1, 1]} : vector<4x16x16xf32> to vector<1x16x16xf32>
    %67 = vector.shape_cast %66 : vector<1x16x16xf32> to vector<16x16xf32>
    %68 = arith.truncf %67 : vector<16x16xf32> to vector<16x16xbf16>
    %c3 = arith.constant 3 : index
    %c0_38 = arith.constant 0 : index
    %c0_39 = arith.constant 0 : index
    %69 = vector.load %arg2[%c3, %c0_38, %c0_39] : memref<4x16x32xbf16, #tpu.memory_space<vmem>>, vector<1x16x32xbf16>
    %70 = vector.shape_cast %69 : vector<1x16x32xbf16> to vector<16x32xbf16>
    %cst_40 = arith.constant dense<0.000000e+00> : vector<16x32xf32>
    %71 = tpu.matmul %68, %70, %cst_40 {dimension_numbers = #tpu.dot_dimension_numbers<[1], [0], [0], [1], [0, 0, 1, 1], [], []>} : vector<16x16xbf16>, vector<16x32xbf16>, vector<16x32xf32> -> vector<16x32xf32>
    %72 = arith.addf %65, %71 : vector<16x32xf32>
    %73 = vector.broadcast %2 : vector<1x32xf32> to vector<16x32xf32>
    %74 = arith.addf %72, %73 : vector<16x32xf32>
    %75 = arith.addf %74, %0 : vector<16x32xf32>
    %cst_41 = arith.constant dense<0.000000e+00> : vector<16xf32>
    %76 = vector.multi_reduction <add>, %75, %cst_41 [1] : vector<16x32xf32> to vector<16xf32>
    %77 = vector.shape_cast %76 : vector<16xf32> to vector<16x1xf32>
    %cst_42 = arith.constant 3.200000e+01 : f32
    %78 = vector.broadcast %cst_42 : f32 to vector<16x1xf32>
    %79 = arith.divf %77, %78 : vector<16x1xf32>
    %80 = vector.broadcast %79 : vector<16x1xf32> to vector<16x32xf32>
    %81 = arith.subf %75, %80 : vector<16x32xf32>
    %82 = arith.mulf %81, %81 : vector<16x32xf32>
    %cst_43 = arith.constant dense<0.000000e+00> : vector<16xf32>
    %83 = vector.multi_reduction <add>, %82, %cst_43 [1] : vector<16x32xf32> to vector<16xf32>
    %84 = vector.shape_cast %83 : vector<16xf32> to vector<16x1xf32>
    %cst_44 = arith.constant 3.100000e+01 : f32
    %85 = vector.broadcast %cst_44 : f32 to vector<16x1xf32>
    %86 = arith.divf %84, %85 : vector<16x1xf32>
    %87 = math.sqrt %86 : vector<16x1xf32>
    %cst_45 = arith.constant 1.000000e-03 : f32
    %88 = vector.broadcast %cst_45 : f32 to vector<16x1xf32>
    %89 = arith.addf %87, %88 : vector<16x1xf32>
    %90 = vector.broadcast %89 : vector<16x1xf32> to vector<16x32xf32>
    %91 = arith.divf %81, %90 : vector<16x32xf32>
    %92 = vector.broadcast %3 : vector<1x32xf32> to vector<16x32xf32>
    %93 = arith.mulf %91, %92 : vector<16x32xf32>
    %94 = vector.broadcast %4 : vector<1x32xf32> to vector<16x32xf32>
    %95 = arith.addf %93, %94 : vector<16x32xf32>
    %96 = arith.truncf %95 : vector<16x32xf32> to vector<16x32xbf16>
    %c0_46 = arith.constant 0 : index
    %c0_47 = arith.constant 0 : index
    %97 = vector.load %arg3[%c0_46, %c0_47] : memref<32x64xbf16, #tpu.memory_space<vmem>>, vector<32x64xbf16>
    %cst_48 = arith.constant dense<0.000000e+00> : vector<16x64xf32>
    %98 = tpu.matmul %96, %97, %cst_48 {dimension_numbers = #tpu.dot_dimension_numbers<[1], [0], [0], [1], [0, 0, 1, 1], [], []>} : vector<16x32xbf16>, vector<32x64xbf16>, vector<16x64xf32> -> vector<16x64xf32>
    %99 = vector.broadcast %5 : vector<1x64xf32> to vector<16x64xf32>
    %100 = arith.addf %98, %99 : vector<16x64xf32>
    %cst_49 = arith.constant 0.000000e+00 : f32
    %101 = vector.broadcast %cst_49 : f32 to vector<16x64xf32>
    %102 = arith.maximumf %100, %101 : vector<16x64xf32>
    %103 = arith.truncf %102 : vector<16x64xf32> to vector<16x64xbf16>
    %c0_50 = arith.constant 0 : index
    %c0_51 = arith.constant 0 : index
    %104 = vector.load %arg4[%c0_50, %c0_51] : memref<64x32xbf16, #tpu.memory_space<vmem>>, vector<64x32xbf16>
    %cst_52 = arith.constant dense<0.000000e+00> : vector<16x32xf32>
    %105 = tpu.matmul %103, %104, %cst_52 {dimension_numbers = #tpu.dot_dimension_numbers<[1], [0], [0], [1], [0, 0, 1, 1], [], []>} : vector<16x64xbf16>, vector<64x32xbf16>, vector<16x32xf32> -> vector<16x32xf32>
    %106 = vector.broadcast %6 : vector<1x32xf32> to vector<16x32xf32>
    %107 = arith.addf %105, %106 : vector<16x32xf32>
    %108 = arith.addf %107, %95 : vector<16x32xf32>
    %cst_53 = arith.constant dense<0.000000e+00> : vector<16xf32>
    %109 = vector.multi_reduction <add>, %108, %cst_53 [1] : vector<16x32xf32> to vector<16xf32>
    %110 = vector.shape_cast %109 : vector<16xf32> to vector<16x1xf32>
    %cst_54 = arith.constant 3.200000e+01 : f32
    %111 = vector.broadcast %cst_54 : f32 to vector<16x1xf32>
    %112 = arith.divf %110, %111 : vector<16x1xf32>
    %113 = vector.broadcast %112 : vector<16x1xf32> to vector<16x32xf32>
    %114 = arith.subf %108, %113 : vector<16x32xf32>
    %115 = arith.mulf %114, %114 : vector<16x32xf32>
    %cst_55 = arith.constant dense<0.000000e+00> : vector<16xf32>
    %116 = vector.multi_reduction <add>, %115, %cst_55 [1] : vector<16x32xf32> to vector<16xf32>
    %117 = vector.shape_cast %116 : vector<16xf32> to vector<16x1xf32>
    %cst_56 = arith.constant 3.100000e+01 : f32
    %118 = vector.broadcast %cst_56 : f32 to vector<16x1xf32>
    %119 = arith.divf %117, %118 : vector<16x1xf32>
    %120 = math.sqrt %119 : vector<16x1xf32>
    %cst_57 = arith.constant 1.000000e-03 : f32
    %121 = vector.broadcast %cst_57 : f32 to vector<16x1xf32>
    %122 = arith.addf %120, %121 : vector<16x1xf32>
    %123 = vector.broadcast %122 : vector<16x1xf32> to vector<16x32xf32>
    %124 = arith.divf %114, %123 : vector<16x32xf32>
    %125 = vector.broadcast %7 : vector<1x32xf32> to vector<16x32xf32>
    %126 = arith.mulf %124, %125 : vector<16x32xf32>
    %127 = vector.broadcast %8 : vector<1x32xf32> to vector<16x32xf32>
    %128 = arith.addf %126, %127 : vector<16x32xf32>
    %c0_58 = arith.constant 0 : index
    %c0_59 = arith.constant 0 : index
    %129 = vector.load %arg7[%c0_58, %c0_59] : memref<16x32xf32, #tpu.memory_space<vmem>>, vector<16x32xf32>
    tpu.vector_store %arg7[%c0_58, %c0_59], %128 {strides = array<i32>} : memref<16x32xf32, #tpu.memory_space<vmem>>, vector<16x32xf32>,
    return
  }
}

</mosaic_0001>

<bundles_post_ra>
// kernel: tpu_custom_call.1
= control target key start
LH: loop header
LB: loop body
LE: loop exit
PB: predicated region body
PF: predicated region fallthrough
CT: control target
= control target key end

     0   :  { %14 = vsyncpa [#allocation3], 0  ;;  %v2224_v1 = vmov 0.0   ;;  %vm2225_vm0 = vmmov 0   ;;  %vm97_vm1 = vcmask 261120   ;;  %s2619_s0 = inlined_call_operand.vmem [shape: f32[16,32], index: 0, kind: input, shape index: {}]   ;;  %s2620_s1 = inlined_call_operand.vmem [shape: bf16[3,4,32,16], index: 1, kind: input, shape index: {}]   ;;  %s2621_s2 = inlined_call_operand.vmem [shape: bf16[4,16,32], index: 2, kind: input, shape index: {}]   ;;  %s2622_s3 = inlined_call_operand.vmem [shape: bf16[32,64], index: 3, kind: input, shape index: {}]   ;;  %s2623_s4 = inlined_call_operand.vmem [shape: bf16[64,32], index: 4, kind: input, shape index: {}]   ;;  %s2624_s5 = inlined_call_operand.vmem [shape: f32[7,64], index: 5, kind: input, shape index: {}]   ;;  %s2625_s6 = inlined_call_operand.vmem [shape: f32[16,16], index: 6, kind: input, shape index: {}]   ;;  %s2626_s7 = inlined_call_operand.hbm [shape: f32[16,32], index: 7, kind: output, shape index: {0}]   ;;  %s2627_s8 = inlined_call_operand.hbm [shape: f32[4,16,16], index: 8, kind: output, shape index: {1}]  }
   0x1   :  { %v2098_v0 = vld [vmem:[%s2620_s1 + $0x8] sm:$0xff]   ;;  %1904 = vmatprep.subr.bf16.mxu0 %v2224_v1  ;;  %1912 = vmatprep.subr.bf16.mxu1 %v2224_v1  ;;  %v2099_v2 = vld [vmem:[%s2620_s1 + $0x18] sm:$0xff]   ;;  %v2100_v3 = vld [vmem:[%s2620_s1] sm:$0xff]  }
   0x2   :  { %1905 = vmatpush3.bf16.msra.mxu0 %v2098_v0  ;;  %1908 = vmatprep.mubr.msk.bf16.mxu0 %vm2225_vm0, %v2224_v1  ;;  %v2101_v4 = vld [vmem:[%s2620_s1 + $0x10] sm:$0xff]   ;;  %v2298_v5 = vld [vmem:[%s2619_s0] sm:$0xff]  ;;  %v2303_v6 = vld [vmem:[%s2619_s0 + $0x8] sm:$0xff] }
   0x3   :  { %1913 = vmatpush3.bf16.msra.mxu1 %v2099_v2  ;;  %1906 = vmatprep.subr.bf16.mxu0 %v2224_v1  ;;  %v2307_v7 = vpack.c.bf16 %v2303_v6, %v2298_v5  ;;  %v2102_v8 = vld [vmem:[%s2620_s1 + $0x28] sm:$0xff]   ;;  %v2103_v9 = vld [vmem:[%s2620_s1 + $0x38] sm:$0xff]   ;;  %v2104_v10 = vld [vmem:[%s2620_s1 + $0x20] sm:$0xff]  }
   0x4   :  { %1914 = vmatprep.subr.bf16.mxu1 %v2224_v1  ;;  %1916 = vmatprep.mubr.msk.bf16.mxu1 %vm2225_vm0, %v2224_v1  ;;  %v2105_v11 = vld [vmem:[%s2620_s1 + $0x30] sm:$0xff]   ;;  %v2106_v12 = vld [vmem:[%s2620_s1 + $0x48] sm:$0xff]   ;;  %v2107_v13 = vld [vmem:[%s2620_s1 + $0x58] sm:$0xff]  }
   0x5   :  { %v2108_v14 = vld [vmem:[%s2620_s1 + $0x40] sm:$0xff]   ;;  %v2109_v15 = vld [vmem:[%s2620_s1 + $0x50] sm:$0xff]   ;;  %v2110_v16 = vld [vmem:[%s2620_s1 + $0x68] sm:$0xff]  }
   0x6   :  { %1907 = vmatpush3.bf16.msra.mxu0 %v2100_v3  ;;  %v2111_v17 = vld [vmem:[%s2620_s1 + $0x78] sm:$0xff]   ;;  %v2112_v18 = vld [vmem:[%s2620_s1 + $0x60] sm:$0xff]   ;;  %v2113_v19 = vld [vmem:[%s2620_s1 + $0x70] sm:$0xff]  }
   0x7   :  { %1915 = vmatpush3.bf16.msra.mxu1 %v2101_v4  ;;  %1920 = vmatprep.subr.bf16.mxu0 %v2224_v1 }
   0x8   :  { %1928 = vmatprep.subr.bf16.mxu1 %v2224_v1 }
   0x9   :  { %1909 = vmatmul.mubr.msk.bf16.vlgmr.msra.gmra.mxu0 %vm97_vm1, %v2307_v7 }
   0xa   :  { %1917 = vmatmul.mubr.msk.bf16.vlgmr.msra.gmra.mxu1 %vm97_vm1, %v2307_v7  ;;  %1921 = vmatpush3.bf16.msra.mxu0 %v2102_v8 }
   0xb   :  { %1929 = vmatpush3.bf16.msra.mxu1 %v2103_v9  ;;  %1922 = vmatprep.subr.bf16.mxu0 %v2224_v1 }
   0xc   :  { %1930 = vmatprep.subr.bf16.mxu1 %v2224_v1  ;;  %1924 = vmatprep.mubr.msk.bf16.mxu0 %vm2225_vm0, %v2224_v1 }
   0xd   :  { %1932 = vmatprep.mubr.msk.bf16.mxu1 %vm2225_vm0, %v2224_v1 }
   0xe   :  { %1923 = vmatpush3.bf16.msra.mxu0 %v2104_v10 }
   0xf   :  { %1931 = vmatpush3.bf16.msra.mxu1 %v2105_v11  ;;  %1936 = vmatprep.subr.bf16.mxu0 %v2224_v1 }
  0x10   :  { %1944 = vmatprep.subr.bf16.mxu1 %v2224_v1 }
  0x11   :  { %1925 = vmatmul.mubr.msk.bf16.vlgmr.msra.gmra.mxu0 %vm97_vm1, %v2307_v7 }
  0x12   :  { %1933 = vmatmul.mubr.msk.bf16.vlgmr.msra.gmra.mxu1 %vm97_vm1, %v2307_v7  ;;  %1937 = vmatpush3.bf16.msra.mxu0 %v2106_v12 }
  0x13   :  { %1945 = vmatpush3.bf16.msra.mxu1 %v2107_v13  ;;  %1938 = vmatprep.subr.bf16.mxu0 %v2224_v1 }
  0x14   :  { %1946 = vmatprep.subr.bf16.mxu1 %v2224_v1  ;;  %1940 = vmatprep.mubr.msk.bf16.mxu0 %vm2225_vm0, %v2224_v1 }
  0x15   :  { %1948 = vmatprep.mubr.msk.bf16.mxu1 %vm2225_vm0, %v2224_v1 }
  0x16   :  { %1939 = vmatpush3.bf16.msra.mxu0 %v2108_v14 }
  0x17   :  { %1947 = vmatpush3.bf16.msra.mxu1 %v2109_v15  ;;  %1952 = vmatprep.subr.bf16.mxu0 %v2224_v1 }
  0x18   :  { %1960 = vmatprep.subr.bf16.mxu1 %v2224_v1 }
  0x19   :  { %1941 = vmatmul.mubr.msk.bf16.vlgmr.msra.gmra.mxu0 %vm97_vm1, %v2307_v7 }
  0x1a   :  { %1949 = vmatmul.mubr.msk.bf16.vlgmr.msra.gmra.mxu1 %vm97_vm1, %v2307_v7  ;;  %1953 = vmatpush3.bf16.msra.mxu0 %v2110_v16 }
  0x1b   :  { %1961 = vmatpush3.bf16.msra.mxu1 %v2111_v17  ;;  %1954 = vmatprep.subr.bf16.mxu0 %v2224_v1 }
  0x1c   :  { %1962 = vmatprep.subr.bf16.mxu1 %v2224_v1  ;;  %1956 = vmatprep.mubr.msk.bf16.mxu0 %vm2225_vm0, %v2224_v1 }
  0x1d   :  { %15 = vsyncpa [#allocation5], 0  ;;  %1964 = vmatprep.mubr.msk.bf16.mxu1 %vm2225_vm0, %v2224_v1  ;;  %v2114_v20 = vld [vmem:[%s2620_s1 + $0x88] sm:$0xff]   ;;  %v2115_v21 = vld [vmem:[%s2620_s1 + $0x80] sm:$0xff]   ;;  %vm733_vm2 = vcmask 130048   ;;  %vm1605_vm7 = vcmask 523264  }
  0x1e   :  { %1955 = vmatpush3.bf16.msra.mxu0 %v2112_v18  ;;  %v2116_v22 = vld [vmem:[%s2620_s1 + $0x98] sm:$0xff]   ;;  %v2117_v23 = vld [vmem:[%s2620_s1 + $0x90] sm:$0xff]   ;;  %v2118_v24 = vld [vmem:[%s2620_s1 + $0xa8] sm:$0xff]  }
  0x1f   :  { %1963 = vmatpush3.bf16.msra.mxu1 %v2113_v19  ;;  %1968 = vmatprep.subr.bf16.mxu0 %v2224_v1  ;;  %v2119_v25 = vld [vmem:[%s2620_s1 + $0xa0] sm:$0xff]   ;;  %v2120_v26 = vld [vmem:[%s2620_s1 + $0xb8] sm:$0xff]   ;;  %v2121_v27 = vld [vmem:[%s2620_s1 + $0xb0] sm:$0xff]  }
  0x20   :  { %1976 = vmatprep.subr.bf16.mxu1 %v2224_v1 }
  0x21   :  { %1957 = vmatmul.mubr.msk.bf16.vlgmr.msra.gmra.mxu0 %vm97_vm1, %v2307_v7 }
  0x22   :  { %1965 = vmatmul.mubr.msk.bf16.vlgmr.msra.gmra.mxu1 %vm97_vm1, %v2307_v7  ;;  %1972 = vmatprep.mubr.msk.bf16.mxu0 %vm2225_vm0, %v2224_v1 }
  0x23   :  { %1980 = vmatprep.mubr.msk.bf16.mxu1 %vm2225_vm0, %v2224_v1  ;;  %1969 = vmatpush3.bf16.msra.mxu0 %v2114_v20 }
  0x24   :  { %1970 = vmatprep.subr.bf16.mxu0 %v2224_v1  ;;  %1977 = vmatpush3.bf16.msra.mxu1 %v2116_v22 }
  0x25   :  { %1978 = vmatprep.subr.bf16.mxu1 %v2224_v1 }
  0x27   :  { %1971 = vmatpush3.bf16.msra.mxu0 %v2115_v21 }
  0x28   :  { %1984 = vmatprep.subr.bf16.mxu0 %v2224_v1  ;;  %1979 = vmatpush3.bf16.msra.mxu1 %v2117_v23 }
  0x29   :  { %1992 = vmatprep.subr.bf16.mxu1 %v2224_v1 }
  0x2a   :  { %1973 = vmatmul.mubr.msk.bf16.vlgmr.msra.gmra.mxu0 %vm97_vm1, %v2307_v7 }
  0x2b   :  { %1985 = vmatpush3.bf16.msra.mxu0 %v2118_v24  ;;  %1988 = vmatprep.mubr.msk.bf16.mxu0 %vm2225_vm0, %v2224_v1 }
  0x2c   :  { %1986 = vmatprep.subr.bf16.mxu0 %v2224_v1  ;;  %1981 = vmatmul.mubr.msk.bf16.vlgmr.msra.gmra.mxu1 %vm97_vm1, %v2307_v7 }
  0x2d   :  { %1993 = vmatpush3.bf16.msra.mxu1 %v2120_v26  ;;  %1996 = vmatprep.mubr.msk.bf16.mxu1 %vm2225_vm0, %v2224_v1 }
  0x2e   :  { %1994 = vmatprep.subr.bf16.mxu1 %v2224_v1 }
  0x2f   :  { %1987 = vmatpush3.bf16.msra.mxu0 %v2119_v25 }
  0x30   :  { %2000 = vmatprep.subr.bf16.mxu0 %v2224_v1 }
  0x31   :  { %1995 = vmatpush3.bf16.msra.mxu1 %v2121_v27 }
  0x32   :  { %1989 = vmatmul.mubr.msk.bf16.vlgmr.msra.gmra.mxu0 %vm97_vm1, %v2307_v7  ;;  %2006 = vmatprep.subr.bf16.mxu1 %v2224_v1 }
  0x33   :  { %2002 = vmatprep.mubr.msk.bf16.mxu0 %vm2225_vm0, %v2224_v1 }
  0x34   :  { %1997 = vmatmul.mubr.msk.bf16.vlgmr.msra.gmra.mxu1 %vm97_vm1, %v2307_v7 }
  0x35   :  { %2008 = vmatprep.mubr.msk.bf16.mxu1 %vm2225_vm0, %v2224_v1 }
  0xc9   :  { %v135_v28 = vpop.f32.mrf.mxu0 }
  0xca   :  { %v188_v29 = vpop.f32.mrf.mxu1 }
  0xcb   :  { %v1910_v30 = vpop.f32.mrf.mxu0 }
  0xcc   :  { %v1918_v31 = vpop.f32.mrf.mxu1 }
  0xcd   :  { %v138_v32 = vpop.f32.mrf.mxu0 }
  0xce   :  { %v191_v33 = vpop.f32.mrf.mxu1  ;;  %v725_v61 = vpack.c.bf16 %v138_v32, %v135_v28  ;;  %v930_v32 = vld [vmem:[%s2625_s6] sm:$0xff] }
  0xcf   :  { %v1911_v34 = vpop.f32.mrf.mxu0  ;;  %v726_v0 = vpack.c.bf16 %v191_v33, %v188_v29 }
  0xd0   :  { %v1919_v35 = vpop.f32.mrf.mxu1 }
  0xd1   :  { %v241_v36 = vpop.f32.mrf.mxu0 }
  0xd2   :  { %v294_v37 = vpop.f32.mrf.mxu1 }
  0xd3   :  { %v1926_v38 = vpop.f32.mrf.mxu0 }
  0xd4   :  { %v1934_v39 = vpop.f32.mrf.mxu1 }
  0xd5   :  { %v244_v40 = vpop.f32.mrf.mxu0 }
  0xd6   :  { %v297_v41 = vpop.f32.mrf.mxu1  ;;  %v727_v9 = vpack.c.bf16 %v244_v40, %v241_v36 }
  0xd7   :  { %v1927_v42 = vpop.f32.mrf.mxu0  ;;  %v728_v10 = vpack.c.bf16 %v297_v41, %v294_v37  ;;  %v931_v41 = vld [vmem:[%s2625_s6 + $0x8] sm:$0xff] }
  0xd8   :  { %v1935_v43 = vpop.f32.mrf.mxu1 }
  0xd9   :  { %v347_v44 = vpop.f32.mrf.mxu0 }
  0xda   :  { %v400_v45 = vpop.f32.mrf.mxu1 }
  0xdb   :  { %v1942_v46 = vpop.f32.mrf.mxu0 }
  0xdc   :  { %v1950_v47 = vpop.f32.mrf.mxu1 }
  0xdd   :  { %v350_v48 = vpop.f32.mrf.mxu0 }
  0xde   :  { %v729_v49 = vpack.c.bf16 %v350_v48, %v347_v44  ;;  %v403_v50 = vpop.f32.mrf.mxu1 }
  0xdf   :  { %v730_v51 = vpack.c.bf16 %v403_v50, %v400_v45  ;;  %v1943_v52 = vpop.f32.mrf.mxu0 }
  0xe0   :  { %v738_v53 = vsel %vm733_vm2, %v729_v49, 0  ;;  %v1951_v54 = vpop.f32.mrf.mxu1 }
  0xe1   :  { %v785_v55 = vsel %vm733_vm2, %v730_v51, 0  ;;  %v453_v56 = vpop.f32.mrf.mxu0  ;;  %2001 = vmatpush3.bf16.xpose.msra.mxu0 %v738_v53 }
  0xe2   :  { %v506_v57 = vpop.f32.mrf.mxu1  ;;  %2007 = vmatpush3.bf16.xpose.msra.mxu1 %v785_v55  ;;  %2012 = vmatprep.subr.bf16.mxu0 %v2224_v1 }
  0xe3   :  { %v1958_v58 = vpop.f32.mrf.mxu0  ;;  %2018 = vmatprep.subr.bf16.mxu1 %v2224_v1 }
  0xe4   :  { %v1966_v59 = vpop.f32.mrf.mxu1 }
  0xe5   :  { %v456_v60 = vpop.f32.mrf.mxu0 }
  0xe6   :  { %v731_v62 = vpack.c.bf16 %v456_v60, %v453_v56  ;;  %v509_v63 = vpop.f32.mrf.mxu1 }
  0xe7   :  { %v732_v2 = vpack.c.bf16 %v509_v63, %v506_v57  ;;  %v1959_v3 = vpop.f32.mrf.mxu0 }
  0xe8   :  { %v832_v4 = vsel %vm733_vm2, %v731_v62, 0  ;;  %v1967_v7 = vpop.f32.mrf.mxu1  ;;  %2003 = vmatmul.mubr.msk.bf16.vlgmr.msra.gmra.mxu0 %vm733_vm2, %v725_v61 }
  0xe9   :  { %v879_v8 = vsel %vm733_vm2, %v732_v2, 0  ;;  %2009 = vmatmul.mubr.msk.bf16.vlgmr.msra.gmra.mxu1 %vm733_vm2, %v726_v0  ;;  %2013 = vmatpush3.bf16.xpose.msra.mxu0 %v832_v4 }
  0xea   :  { %2019 = vmatpush3.bf16.xpose.msra.mxu1 %v879_v8  ;;  %2014 = vmatprep.mubr.msk.bf16.mxu0 %vm2225_vm0, %v2224_v1  ;;  %v559_v11 = vpop.f32.mrf.mxu0 }
  0xeb   :  { %2020 = vmatprep.mubr.msk.bf16.mxu1 %vm2225_vm0, %v2224_v1  ;;  %2024 = vmatprep.subr.bf16.mxu0 %v2224_v1 }
  0xec   :  { %2030 = vmatprep.subr.bf16.mxu1 %v2224_v1  ;;  %v1974_v12 = vpop.f32.mrf.mxu0  ;;  %v612_v14 = vpop.f32.mrf.mxu1 }
  0xee   :  { %v562_v13 = vpop.f32.mrf.mxu0  ;;  %v1982_v17 = vpop.f32.mrf.mxu1 }
  0xef   :  { %v1040_v15 = vpack.c.bf16 %v562_v13, %v559_v11 }
  0xf0   :  { %2015 = vmatmul.mubr.msk.bf16.vlgmr.msra.gmra.mxu0 %vm733_vm2, %v727_v9  ;;  %v1975_v16 = vpop.f32.mrf.mxu0  ;;  %v615_v18 = vpop.f32.mrf.mxu1 }
  0xf1   :  { %2021 = vmatmul.mubr.msk.bf16.vlgmr.msra.gmra.mxu1 %vm733_vm2, %v728_v10  ;;  %2026 = vmatprep.mubr.msk.bf16.mxu0 %vm2225_vm0, %v2224_v1  ;;  %v1041_v20 = vpack.c.bf16 %v615_v18, %v612_v14 }
  0xf2   :  { %2032 = vmatprep.mubr.msk.bf16.mxu1 %vm2225_vm0, %v2224_v1  ;;  %2025 = vmatpush3.bf16.msra.mxu0 %v1040_v15  ;;  %v2459_v19 = vpop.f32.mrf.mxu0  ;;  %v1983_v21 = vpop.f32.mrf.mxu1 }
  0xf3   :  { %2036 = vmatprep.subr.bf16.mxu0 %v2224_v1  ;;  %2031 = vmatpush3.bf16.msra.mxu1 %v1041_v20 }
  0xf4   :  { %v1990_v22 = vpop.f32.mrf.mxu0  ;;  %v2464_v24 = vpop.f32.mrf.mxu1  ;;  %2042 = vmatprep.subr.bf16.mxu1 %v2224_v1 }
  0xf6   :  { %v2462_v23 = vpop.f32.mrf.mxu0  ;;  %v1998_v27 = vpop.f32.mrf.mxu1 }
  0xf7   :  { %v1042_v25 = vpack.c.bf16 %v2462_v23, %v2459_v19 }
  0xf8   :  { %v1991_v26 = vpop.f32.mrf.mxu0  ;;  %v2469_v28 = vpop.f32.mrf.mxu1 }
  0xf9   :  { %v1043_v29 = vpack.c.bf16 %v2469_v28, %v2464_v24  ;;  %v2123_v28 = vld [vmem:[%s2621_s2] sm:$0xff]  }
  0xfa   :  { %v1999_v30 = vpop.f32.mrf.mxu1 }
 0x1a8   :  { %v774_v31 = vpop.f32.mrf.mxu0 }
 0x1a9   :  { %v922_v33 = vmul.f32 0.17677669, %v774_v31  ;;  %v821_v34 = vpop.f32.mrf.mxu1 }
 0x1aa   :  { %v924_v35 = vmul.f32 0.17677669, %v821_v34  ;;  %v2004_v36 = vpop.f32.mrf.mxu0 }
 0x1ab   :  { %v2010_v37 = vpop.f32.mrf.mxu1  ;;  %v932_v38 = vadd.f32 %v930_v32, %v922_v33 }
 0x1ac   :  { %v777_v39 = vpop.f32.mrf.mxu0  ;;  %v934_v40 = vadd.f32 %v930_v32, %v924_v35 }
 0x1ad   :  { %v923_v42 = vmul.f32 0.17677669, %v777_v39  ;;  %v824_v43 = vpop.f32.mrf.mxu1  ;;  %v940_v44 = vsel %vm733_vm2, %v932_v38, -inf }
 0x1ae   :  { %v925_v45 = vmul.f32 0.17677669, %v824_v43  ;;  %v946_v46 = vsel %vm733_vm2, %v934_v40, -inf  ;;  %941 = vmax.xlane.f32.xlu0 %v940_v44  ;;  %v2005_v47 = vpop.f32.mrf.mxu0 }
 0x1af   :  { %947 = vmax.xlane.f32.xlu1 %v946_v46  ;;  %v2011_v48 = vpop.f32.mrf.mxu1  ;;  %v933_v49 = vadd.f32 %v931_v41, %v923_v42 }
 0x1b0   :  { %v868_v50 = vpop.f32.mrf.mxu0  ;;  %v935_v51 = vadd.f32 %v931_v41, %v925_v45 }
 0x1b1   :  { %v926_v52 = vmul.f32 0.17677669, %v868_v50  ;;  %v915_v53 = vpop.f32.mrf.mxu1  ;;  %v943_v54 = vsel %vm733_vm2, %v933_v49, -inf }
 0x1b2   :  { %v928_v55 = vmul.f32 0.17677669, %v915_v53  ;;  %v949_v56 = vsel %vm733_vm2, %v935_v51, -inf  ;;  %944 = vmax.xlane.f32.xlu0 %v943_v54  ;;  %v2016_v57 = vpop.f32.mrf.mxu0 }
 0x1b3   :  { %950 = vmax.xlane.f32.xlu1 %v949_v56  ;;  %v2022_v58 = vpop.f32.mrf.mxu1  ;;  %v936_v59 = vadd.f32 %v930_v32, %v926_v52 }
 0x1b4   :  { %v871_v60 = vpop.f32.mrf.mxu0  ;;  %v938_v0 = vadd.f32 %v930_v32, %v928_v55 }
 0x1b5   :  { %v927_v61 = vmul.f32 0.17677669, %v871_v60  ;;  %v918_v62 = vpop.f32.mrf.mxu1  ;;  %v952_v63 = vsel %vm733_vm2, %v936_v59, -inf }
 0x1b6   :  { %v929_v2 = vmul.f32 0.17677669, %v918_v62  ;;  %953 = vmax.xlane.f32.xlu0 %v952_v63  ;;  %v2017_v3 = vpop.f32.mrf.mxu0  ;;  %v958_v8 = vsel %vm733_vm2, %v938_v0, -inf }
 0x1b7   :  { %v2023_v4 = vpop.f32.mrf.mxu1  ;;  %v937_v7 = vadd.f32 %v931_v41, %v927_v61 }
 0x1b8   :  { %v939_v10 = vadd.f32 %v931_v41, %v929_v2 }
 0x1b9   :  { %v955_v9 = vsel %vm733_vm2, %v937_v7, -inf }
 0x1ba   :  { %959 = vmax.xlane.f32.xlu0 %v958_v8  ;;  %956 = vmax.xlane.f32.xlu1 %v955_v9  ;;  %v961_v11 = vsel %vm733_vm2, %v939_v10, -inf }
 0x1be   :  { %962 = vmax.xlane.f32.xlu1 %v961_v11 }
 0x237   :  { %v942_v12 = vpop.xlane.xlu0 %941 }
 0x238   :  { %v948_v13 = vpop.xlane.xlu1 %947  ;;  %v964_v14 = vsub.f32 %v932_v38, %v942_v12 }
 0x239   :  { %v966_v15 = vsub.f32 %v934_v40, %v948_v13 }
 0x23a   :  { %v972_v16 = vmul.f32 1.442695, %v964_v14 }
 0x23b   :  { %v976_v17 = vmul.f32 1.442695, %v966_v15  ;;  %v945_v18 = vpop.xlane.xlu0 %944 }
 0x23c   :  { %2132 = vpow2.f32 %v972_v16  ;;  %v951_v20 = vpop.xlane.xlu1 %950  ;;  %v965_v21 = vsub.f32 %v933_v49, %v945_v18 }
 0x23d   :  { %v967_v22 = vsub.f32 %v935_v51, %v951_v20  ;;  %2134 = vpow2.f32 %v976_v17 }
 0x23e   :  { %v974_v26 = vmul.f32 1.442695, %v965_v21 }
 0x23f   :  { %v978_v27 = vmul.f32 1.442695, %v967_v22  ;;  %v954_v30 = vpop.xlane.xlu0 %953 }
 0x240   :  { %2136 = vpow2.f32 %v974_v26  ;;  %v968_v31 = vsub.f32 %v936_v59, %v954_v30 }
 0x241   :  { %2138 = vpow2.f32 %v978_v27 }
 0x242   :  { %v980_v32 = vmul.f32 1.442695, %v968_v31  ;;  %v2125_v31 = vld [vmem:[%s2621_s2 + $0x18] sm:$0xff]  }
 0x243   :  { %v960_v33 = vpop.xlane.xlu0 %959  ;;  %v957_v34 = vpop.xlane.xlu1 %956 }
 0x244   :  { %2140 = vpow2.f32 %v980_v32  ;;  %v970_v35 = vsub.f32 %v938_v0, %v960_v33  ;;  %v969_v36 = vsub.f32 %v937_v7, %v957_v34 }
 0x246   :  { %v984_v37 = vmul.f32 1.442695, %v970_v35  ;;  %v982_v38 = vmul.f32 1.442695, %v969_v36 }
 0x247   :  { %v963_v39 = vpop.xlane.xlu1 %962 }
 0x248   :  { %2142 = vpow2.f32 %v984_v37  ;;  %v971_v40 = vsub.f32 %v939_v10, %v963_v39  ;;  %v2124_v37 = vld [vmem:[%s2621_s2 + $0x10] sm:$0xff]  }
 0x249   :  { %v2133_v41 = vpop.eup %2132  ;;  %2144 = vpow2.f32 %v982_v38 }
 0x24a   :  { %v986_v42 = vmul.f32 1.442695, %v971_v40  ;;  %v988_v43 = vsel %vm733_vm2, %v2133_v41, 0.0  ;;  %v2135_v44 = vpop.eup %2134 }
 0x24b   :  { %989 = vadd.xlane.f32.xlu0 %v988_v43  ;;  %v994_v46 = vsel %vm733_vm2, %v2135_v44, 0.0 }
 0x24c   :  { %2146 = vpow2.f32 %v986_v42 }
 0x24d   :  { %v2137_v45 = vpop.eup %2136 }
 0x24e   :  { %v991_v47 = vsel %vm733_vm2, %v2137_v45, 0.0  ;;  %v2139_v48 = vpop.eup %2138 }
 0x24f   :  { %995 = vadd.xlane.f32.xlu0 %v994_v46  ;;  %992 = vadd.xlane.f32.xlu1 %v991_v47  ;;  %v997_v51 = vsel %vm733_vm2, %v2139_v48, 0.0 }
 0x251   :  { %v2141_v49 = vpop.eup %2140 }
 0x252   :  { %v1000_v50 = vsel %vm733_vm2, %v2141_v49, 0.0 }
 0x253   :  { %1001 = vadd.xlane.f32.xlu0 %v1000_v50  ;;  %998 = vadd.xlane.f32.xlu1 %v997_v51  ;;  %v1439_v50 = vlaneseq }
 0x255   :  { %v2143_v52 = vpop.eup %2142 }
 0x256   :  { %v2145_v53 = vpop.eup %2144  ;;  %v1006_v54 = vsel %vm733_vm2, %v2143_v52, 0.0 }
 0x257   :  { %1007 = vadd.xlane.f32.xlu0 %v1006_v54  ;;  %v1003_v55 = vsel %vm733_vm2, %v2145_v53, 0.0  ;;  %v2551_v54 = vshrl.u32 %v1439_v50, 7 }
 0x258   :  { %1004 = vadd.xlane.f32.xlu1 %v1003_v55 }
 0x259   :  { %v2147_v56 = vpop.eup %2146 }
 0x25a   :  { %v1009_v57 = vsel %vm733_vm2, %v2147_v56, 0.0 }
 0x25c   :  { %1010 = vadd.xlane.f32.xlu1 %v1009_v57 }
 0x2d4   :  { %v990_v58 = vpop.xlane.xlu0 %989 }
 0x2d5   :  { %2148 = vrcp.f32 %v990_v58  ;;  %v1441_v58 = vsub.s32 0, %v2551_v54 }
 0x2d8   :  { %v996_v59 = vpop.xlane.xlu0 %995  ;;  %v993_v60 = vpop.xlane.xlu1 %992 }
 0x2d9   :  { %2150 = vrcp.f32 %v996_v59 }
 0x2da   :  { %2152 = vrcp.f32 %v993_v60  ;;  %v2557_v60 = vld [vmem:[%s2624_s5] sm:$0x7f] }
 0x2dc   :  { %v1002_v61 = vpop.xlane.xlu0 %1001  ;;  %v999_v62 = vpop.xlane.xlu1 %998 }
 0x2dd   :  { %2154 = vrcp.f32 %v1002_v61 }
 0x2de   :  { %2156 = vrcp.f32 %v999_v62 }
 0x2e0   :  { %v1008_v63 = vpop.xlane.xlu0 %1007 }
 0x2e1   :  { %2158 = vrcp.f32 %v1008_v63  ;;  %v1005_v0 = vpop.xlane.xlu1 %1004 }
 0x2e2   :  { %v2149_v2 = vpop.eup %2148  ;;  %2160 = vrcp.f32 %v1005_v0 }
 0x2e3   :  { %v1013_v3 = vmul.f32 %v2149_v2, %v2133_v41  ;;  %v1442_v2 = vrot.slane %v2557_v60, %v1441_v58 }
 0x2e5   :  { %v1011_v4 = vpop.xlane.xlu1 %1010  ;;  %1028 = vst.msk [vmem:[#allocation4] sm:$0xff] %vm733_vm2, %v1013_v3 }
 0x2e6   :  { %v2151_v7 = vpop.eup %2150  ;;  %2162 = vrcp.f32 %v1011_v4 }
 0x2e7   :  { %v2153_v8 = vpop.eup %2152  ;;  %v1017_v9 = vmul.f32 %v2151_v7, %v2135_v44 }
 0x2e8   :  { %v1015_v10 = vmul.f32 %v2153_v8, %v2137_v45 }
 0x2e9   :  { %1030 = vst.msk [vmem:[#allocation4 + $0x10] sm:$0xff] %vm733_vm2, %v1017_v9 }
 0x2ea   :  { %v2155_v11 = vpop.eup %2154  ;;  %1029 = vst.msk [vmem:[#allocation4 + $0x8] sm:$0xff] %vm733_vm2, %v1015_v10  ;;  %v1036_v12 = vpack.c.bf16 %v1015_v10, %v1013_v3 }
 0x2eb   :  { %v2157_v13 = vpop.eup %2156  ;;  %v1021_v14 = vmul.f32 %v2155_v11, %v2141_v49 }
 0x2ec   :  { %2027 = vmatmul.mubr.msk.bf16.vlgmr.msra.gmra.mxu0 %vm733_vm2, %v1036_v12  ;;  %v1019_v15 = vmul.f32 %v2157_v13, %v2139_v48 }
 0x2ed   :  { %2037 = vmatpush3.bf16.msra.mxu0 %v1042_v25  ;;  %2038 = vmatprep.mubr.msk.bf16.mxu0 %vm2225_vm0, %v2224_v1  ;;  %1032 = vst.msk [vmem:[#allocation4 + $0x20] sm:$0xff] %vm733_vm2, %v1021_v14 }
 0x2ee   :  { %v2159_v16 = vpop.eup %2158  ;;  %1031 = vst.msk [vmem:[#allocation4 + $0x18] sm:$0xff] %vm733_vm2, %v1019_v15  ;;  %v1037_v17 = vpack.c.bf16 %v1019_v15, %v1017_v9  ;;  %2048 = vmatprep.subr.bf16.mxu0 %v2224_v1 }
 0x2ef   :  { %v2161_v18 = vpop.eup %2160  ;;  %v1025_v20 = vmul.f32 %v2159_v16, %v2143_v52 }
 0x2f0   :  { %2033 = vmatmul.mubr.msk.bf16.vlgmr.msra.gmra.mxu1 %vm733_vm2, %v1037_v17  ;;  %v1023_v21 = vmul.f32 %v2161_v18, %v2145_v53 }
 0x2f1   :  { %2043 = vmatpush3.bf16.msra.mxu1 %v1043_v29  ;;  %2044 = vmatprep.mubr.msk.bf16.mxu1 %vm2225_vm0, %v2224_v1  ;;  %1034 = vst.msk [vmem:[#allocation4 + $0x30] sm:$0xff] %vm733_vm2, %v1025_v20  ;;  %v2122_v29 = vld [vmem:[%s2621_s2 + $0x8] sm:$0xff]  }
 0x2f2   :  { %1033 = vst.msk [vmem:[#allocation4 + $0x28] sm:$0xff] %vm733_vm2, %v1023_v21  ;;  %v1038_v19 = vpack.c.bf16 %v1023_v21, %v1021_v14  ;;  %2054 = vmatprep.subr.bf16.mxu1 %v2224_v1 }
 0x2f3   :  { %v2163_v23 = vpop.eup %2162 }
 0x2f4   :  { %2039 = vmatmul.mubr.msk.bf16.vlgmr.msra.gmra.mxu0 %vm733_vm2, %v1038_v19  ;;  %v1027_v25 = vmul.f32 %v2163_v23, %v2147_v56 }
 0x2f5   :  { %2050 = vmatprep.mubr.msk.bf16.mxu0 %vm2225_vm0, %v2224_v1  ;;  %2049 = vmatpush3.bf16.msra.mxu0 %v2122_v29 }
 0x2f6   :  { %1035 = vst.msk [vmem:[#allocation4 + $0x38] sm:$0xff] %vm733_vm2, %v1027_v25  ;;  %v1039_v24 = vpack.c.bf16 %v1027_v25, %v1025_v20  ;;  %2060 = vmatprep.subr.bf16.mxu0 %v2224_v1 }
 0x2f8   :  { %2045 = vmatmul.mubr.msk.bf16.vlgmr.msra.gmra.mxu1 %vm733_vm2, %v1039_v24 }
 0x2f9   :  { %2056 = vmatprep.mubr.msk.bf16.mxu1 %vm2225_vm0, %v2224_v1  ;;  %2055 = vmatpush3.bf16.msra.mxu1 %v2123_v28 }
 0x2fa   :  { %2066 = vmatprep.subr.bf16.mxu1 %v2224_v1 }
 0x3ac   :  { %v1081_v22 = vpop.f32.mrf.mxu0 }
 0x3ae   :  { %v2028_v26 = vpop.f32.mrf.mxu0 }
 0x3b0   :  { %v1084_v27 = vpop.f32.mrf.mxu0  ;;  %v1125_v30 = vpop.f32.mrf.mxu1 }
 0x3b1   :  { %v1220_v32 = vpack.c.bf16 %v1084_v27, %v1081_v22 }
 0x3b2   :  { %v2029_v33 = vpop.f32.mrf.mxu0  ;;  %v2034_v34 = vpop.f32.mrf.mxu1 }
 0x3b3   :  { %2057 = vmatmul.mubr.msk.bf16.vlgmr.msra.gmra.mxu1 %vm733_vm2, %v1220_v32 }
 0x3b4   :  { %v1128_v35 = vpop.f32.mrf.mxu1  ;;  %v1169_v36 = vpop.f32.mrf.mxu0  ;;  %2067 = vmatpush3.bf16.msra.mxu1 %v2125_v31  ;;  %2068 = vmatprep.mubr.msk.bf16.mxu1 %vm2225_vm0, %v2224_v1  ;;  %v2128_v31 = vld [vmem:[%s2623_s4 + $0x18] sm:$0xff]  }
 0x3b5   :  { %v1223_v38 = vpack.c.bf16 %v1128_v35, %v1125_v30  ;;  %2080 = vmatprep.subr.bf16.mxu1 %v2224_v1  ;;  %v2127_v30 = vld [vmem:[%s2622_s3] sm:$0xff]  }
 0x3b6   :  { %v2035_v39 = vpop.f32.mrf.mxu1  ;;  %v2040_v40 = vpop.f32.mrf.mxu0 }
 0x3b7   :  { %2051 = vmatmul.mubr.msk.bf16.vlgmr.msra.gmra.mxu0 %vm733_vm2, %v1223_v38 }
 0x3b8   :  { %v1172_v41 = vpop.f32.mrf.mxu0  ;;  %v1213_v42 = vpop.f32.mrf.mxu1  ;;  %2061 = vmatpush3.bf16.msra.mxu0 %v2124_v37  ;;  %2062 = vmatprep.mubr.msk.bf16.mxu0 %vm2225_vm0, %v2224_v1 }
 0x3b9   :  { %2072 = vmatprep.subr.bf16.mxu0 %v2224_v1  ;;  %v1327_v46 = vpack.c.bf16 %v1172_v41, %v1169_v36 }
 0x3ba   :  { %v2041_v43 = vpop.f32.mrf.mxu0  ;;  %v2046_v44 = vpop.f32.mrf.mxu1 }
 0x3bc   :  { %v1216_v45 = vpop.f32.mrf.mxu1 }
 0x3bd   :  { %v1383_v47 = vpack.c.bf16 %v1216_v45, %v1213_v42 }
 0x3be   :  { %v2047_v48 = vpop.f32.mrf.mxu1 }
 0x3bf   :  { %2063 = vmatmul.mubr.msk.bf16.vlgmr.msra.gmra.mxu0 %vm733_vm2, %v1327_v46  ;;  %2069 = vmatmul.mubr.msk.bf16.vlgmr.msra.gmra.mxu1 %vm733_vm2, %v1383_v47  ;;  %v1491_v48 = vsub.s32 1, %v2551_v54 }
 0x3c0   :  { %2076 = vmatprep.mubr.msk.bf16.mxu0 %vm2225_vm0, %v2224_v1  ;;  %2088 = vmatprep.mubr.msk.bf16.mxu1 %vm2225_vm0, %v2224_v1 }
 0x3c1   :  { %2081 = vmatpush3.bf16.msra.mxu1 %v2128_v31 }
 0x3c2   :  { %2082 = vmatprep.subr.bf16.mxu1 %v2224_v1 }
 0x473   :  { %v1320_v49 = vpop.f32.mrf.mxu1 }
 0x475   :  { %v2058_v51 = vpop.f32.mrf.mxu1 }
 0x476   :  { %v1492_v51 = vrot.slane %v2557_v60, %v1491_v48 }
 0x477   :  { %v1270_v52 = vpop.f32.mrf.mxu0  ;;  %v1323_v53 = vpop.f32.mrf.mxu1 }
 0x478   :  { %v1321_v61 = vadd.f32 %v1320_v49, %v1270_v52  ;;  %v1497_v52 = vsub.s32 2, %v2551_v54 }
 0x479   :  { %v2052_v55 = vpop.f32.mrf.mxu0  ;;  %v2059_v56 = vpop.f32.mrf.mxu1 }
 0x47b   :  { %v1273_v57 = vpop.f32.mrf.mxu0 }
 0x47c   :  { %v1324_v7 = vadd.f32 %v1323_v53, %v1273_v57  ;;  %v1498_v57 = vrot.slane %v2557_v60, %v1497_v52 }
 0x47d   :  { %v2053_v59 = vpop.f32.mrf.mxu0 }
 0x47f   :  { %v1374_v62 = vpop.f32.mrf.mxu0  ;;  %v1430_v63 = vpop.f32.mrf.mxu1 }
 0x480   :  { %v1381_v0 = vadd.f32 %v1374_v62, %v1321_v61 }
 0x481   :  { %v2064_v3 = vpop.f32.mrf.mxu0  ;;  %v2070_v4 = vpop.f32.mrf.mxu1 }
 0x482   :  { %v1437_v8 = vadd.f32 %v1430_v63, %v1381_v0  ;;  %v2129_v63 = vld [vmem:[%s2623_s4 + $0x10] sm:$0xff]   ;;  %v2130_v0 = vld [vmem:[%s2623_s4 + $0x8] sm:$0xff]   ;;  %v1508_v3 = vsub.s32 3, %v2551_v54 }
 0x483   :  { %v1377_v9 = vpop.f32.mrf.mxu0  ;;  %v1433_v10 = vpop.f32.mrf.mxu1  ;;  %2083 = vmatpush3.bf16.msra.mxu1 %v2129_v63 }
 0x484   :  { %v1443_v11 = vadd.f32 %v1442_v2, %v1437_v8  ;;  %v1382_v12 = vadd.f32 %v1377_v9, %v1324_v7  ;;  %2084 = vmatprep.subr.bf16.mxu1 %v2224_v1  ;;  %v1509_v4 = vrot.slane %v2557_v60, %v1508_v3 }
 0x485   :  { %v2065_v13 = vpop.f32.mrf.mxu0  ;;  %v2071_v14 = vpop.f32.mrf.mxu1 }
 0x486   :  { %v1438_v15 = vadd.f32 %v1433_v10, %v1382_v12  ;;  %v1445_v16 = vadd.f32 %v1443_v11, %v2298_v5 }
 0x487   :  { %2085 = vmatpush3.bf16.msra.mxu1 %v2130_v0 }
 0x488   :  { %v1444_v17 = vadd.f32 %v1442_v2, %v1438_v15  ;;  %v1447_v18 = vsel %vm97_vm1, %v1445_v16, 0.0  ;;  %2086 = vmatprep.subr.bf16.mxu1 %v2224_v1  ;;  %v2131_v2 = vld [vmem:[%s2623_s4] sm:$0xff]   ;;  %s2226_s4 = smov [#allocation4]  }
 0x489   :  { %1448 = vadd.xlane.f32.xlu0 %v1447_v18  ;;  %s1723_s9 = sshll.u32 %s2226_s4, 4  ;;  %s1724_s9 = int_to_ptr.vmem [resolvable:$true] %s1723_s9 }
 0x48a   :  { %v1446_v20 = vadd.f32 %v1444_v17, %v2303_v6  ;;  %v2126_v6 = vld [vmem:[%s2622_s3 + $0x8] sm:$0xff]   ;;  %s2180_s10 = scalar_lea.vmem %s1724_s9, 1024  ;;  %p2185_p1 = scmp.lt.s32.totalorder %s1724_s9, %s1724_s9 }
 0x48b   :  { %2073 = vmatpush3.bf16.msra.mxu0 %v2126_v6  ;;  %2087 = vmatpush3.bf16.msra.mxu1 %v2131_v2  ;;  %p2181_p0 = scmp.ne.s32.totalorder %s1724_s9, %s2180_s10  ;;  %p2186_p2 = scmp.lt.s32.totalorder %s2180_s10, %s2180_s10 }
 0x48c   :  { %v1450_v21 = vsel %vm97_vm1, %v1446_v20, 0.0  ;;  %2074 = vmatprep.subr.bf16.mxu0 %v2224_v1  ;;  %v1579_v1 = vsub.s32 4, %v2551_v54 }
 0x48d   :  { %1451 = vadd.xlane.f32.xlu1 %v1450_v21  ;;  %p2187_p3 = por %p2186_p2, %p2185_p1 }
 0x48f   :  { %2075 = vmatpush3.bf16.msra.mxu0 %v2127_v30  ;;  %p2188_p4 = pnand %p2187_p3, %p2181_p0 }
 0x512   :  { %v1449_v19 = vpop.xlane.xlu0 %1448 }
 0x513   :  { %v1454_v23 = vmul.f32 0.03125, %v1449_v19 }
 0x515   :  { %v1456_v25 = vsub.f32 %v1445_v16, %v1454_v23  ;;  %v1580_v16 = vrot.slane %v2557_v60, %v1579_v1 }
 0x516   :  { %v1452_v24 = vpop.xlane.xlu1 %1451 }
 0x517   :  { %v1455_v28 = vmul.f32 0.03125, %v1452_v24  ;;  %v1458_v29 = vmul.f32 %v1456_v25, %v1456_v25 }
 0x519   :  { %v1457_v22 = vsub.f32 %v1446_v20, %v1455_v28  ;;  %v1460_v26 = vsel %vm97_vm1, %v1458_v29, 0.0 }
 0x51a   :  { %1461 = vadd.xlane.f32.xlu0 %v1460_v26 }
 0x51b   :  { %v1459_v5 = vmul.f32 %v1457_v22, %v1457_v22 }
 0x51d   :  { %v1463_v27 = vsel %vm97_vm1, %v1459_v5, 0.0 }
 0x51e   :  { %1464 = vadd.xlane.f32.xlu1 %v1463_v27 }
 0x5a3   :  { %v1462_v32 = vpop.xlane.xlu0 %1461 }
 0x5a4   :  { %v1467_v33 = vmul.f32 0.032258064, %v1462_v32 }
 0x5a6   :  { %2164 = vrsqrt.f32 %v1467_v33  ;;  %vm1471_vm3 = vcmp.eq.f32.partialorder %v1467_v33, inf  ;;  %v1474_v38 = vand.u32 2147483648, %v1467_v33  ;;  %vm1473_vm4 = vcmp.eq.f32.partialorder %v1467_v33, 0.0 }
 0x5a7   :  { %v1465_v34 = vpop.xlane.xlu1 %1464 }
 0x5a8   :  { %v1468_v35 = vmul.f32 0.032258064, %v1465_v34 }
 0x5aa   :  { %2166 = vrsqrt.f32 %v1468_v35  ;;  %vm1478_vm5 = vcmp.eq.f32.partialorder %v1468_v35, inf  ;;  %v1481_v44 = vand.u32 2147483648, %v1468_v35  ;;  %vm1480_vm6 = vcmp.eq.f32.partialorder %v1468_v35, 0.0 }
 0x5b3   :  { %v2165_v36 = vpop.eup %2164 }
 0x5b4   :  { %v1470_v37 = vmul.f32 %v2165_v36, %v1467_v33 }
 0x5b6   :  { %v1472_v39 = vsel %vm1471_vm3, %v1467_v33, %v1470_v37 }
 0x5b7   :  { %v2167_v40 = vpop.eup %2166  ;;  %v1475_v41 = vsel %vm1473_vm4, %v1474_v38, %v1472_v39 }
 0x5b8   :  { %v1483_v42 = vadd.f32 0.001, %v1475_v41  ;;  %v1477_v43 = vmul.f32 %v2167_v40, %v1468_v35 }
 0x5ba   :  { %2168 = vrcp.f32 %v1483_v42  ;;  %v1479_v45 = vsel %vm1478_vm5, %v1468_v35, %v1477_v43 }
 0x5bb   :  { %v1482_v46 = vsel %vm1480_vm6, %v1481_v44, %v1479_v45 }
 0x5bc   :  { %v1484_v47 = vadd.f32 0.001, %v1482_v46 }
 0x5be   :  { %2170 = vrcp.f32 %v1484_v47 }
 0x5c7   :  { %v2169_v49 = vpop.eup %2168 }
 0x5c8   :  { %v1486_v50 = vmul.f32 %v2169_v49, %v1456_v25 }
 0x5ca   :  { %v1493_v56 = vmul.f32 %v1492_v51, %v1486_v50 }
 0x5cb   :  { %v2171_v53 = vpop.eup %2170 }
 0x5cc   :  { %v1488_v55 = vmul.f32 %v2171_v53, %v1457_v22  ;;  %v1499_v59 = vadd.f32 %v1498_v57, %v1493_v56 }
 0x5ce   :  { %v1494_v58 = vmul.f32 %v1492_v51, %v1488_v55 }
 0x5d0   :  { %v1500_v61 = vadd.f32 %v1498_v57, %v1494_v58 }
 0x5d2   :  { %v1501_v62 = vpack.c.bf16 %v1500_v61, %v1499_v59 }
 0x5d4   :  { %2077 = vmatmul.mubr.msk.bf16.vlgmr.msra.gmra.mxu0 %vm97_vm1, %v1501_v62 }
 0x694   :  { %v1559_v7 = vpop.f32.mrf.mxu0 }
 0x695   :  { %v1560_v9 = vadd.f32 %v1559_v7, %v1509_v4 }
 0x696   :  { %v2078_v8 = vpop.f32.mrf.mxu0 }
 0x697   :  { %v1566_v13 = vmax.f32 %v1560_v9, 0.0 }
 0x698   :  { %v1562_v10 = vpop.f32.mrf.mxu0 }
 0x699   :  { %v1563_v11 = vadd.f32 %v1562_v10, %v1509_v4 }
 0x69a   :  { %v2079_v12 = vpop.f32.mrf.mxu0 }
 0x69b   :  { %v1567_v14 = vmax.f32 %v1563_v11, 0.0 }
 0x69d   :  { %v1568_v15 = vpack.c.bf16 %v1567_v14, %v1566_v13 }
 0x69f   :  { %2089 = vmatmul.mubr.msk.bf16.vlgmr.msra.gmra.mxu1 %vm1605_vm7, %v1568_v15 }
 0x75f   :  { %v1643_v17 = vpop.f32.mrf.mxu1 }
 0x760   :  { %v1644_v18 = vadd.f32 %v1643_v17, %v1580_v16 }
 0x761   :  { %v2090_v20 = vpop.f32.mrf.mxu1 }
 0x762   :  { %v1650_v21 = vadd.f32 %v1644_v18, %v1499_v59 }
 0x763   :  { %v1646_v19 = vpop.f32.mrf.mxu1 }
 0x764   :  { %v1647_v23 = vadd.f32 %v1646_v19, %v1580_v16  ;;  %v1652_v25 = vsel %vm97_vm1, %v1650_v21, 0.0 }
 0x765   :  { %1653 = vadd.xlane.f32.xlu0 %v1652_v25  ;;  %v2091_v24 = vpop.f32.mrf.mxu1 }
 0x766   :  { %v1651_v28 = vadd.f32 %v1647_v23, %v1500_v61 }
 0x768   :  { %v1655_v29 = vsel %vm97_vm1, %v1651_v28, 0.0 }
 0x769   :  { %1656 = vadd.xlane.f32.xlu1 %v1655_v29 }
 0x7ee   :  { %v1654_v22 = vpop.xlane.xlu0 %1653 }
 0x7ef   :  { %v1658_v26 = vmul.f32 0.03125, %v1654_v22 }
 0x7f1   :  { %v1660_v5 = vsub.f32 %v1650_v21, %v1658_v26 }
 0x7f2   :  { %v1657_v27 = vpop.xlane.xlu1 %1656 }
 0x7f3   :  { %v1659_v6 = vmul.f32 0.03125, %v1657_v27  ;;  %v1662_v30 = vmul.f32 %v1660_v5, %v1660_v5 }
 0x7f5   :  { %v1661_v31 = vsub.f32 %v1651_v28, %v1659_v6  ;;  %v1664_v32 = vsel %vm97_vm1, %v1662_v30, 0.0 }
 0x7f6   :  { %1665 = vadd.xlane.f32.xlu0 %v1664_v32 }
 0x7f7   :  { %v1663_v33 = vmul.f32 %v1661_v31, %v1661_v31 }
 0x7f9   :  { %v1667_v34 = vsel %vm97_vm1, %v1663_v33, 0.0 }
 0x7fa   :  { %1668 = vadd.xlane.f32.xlu1 %v1667_v34 }
 0x7fb   :  { %2191 = shalt.err (!%p2188_p4)
}
 0x7fc   :  { %s2227_s1 = smov 128   ;;  %s2228_s11 = smov 8   ;;  %v1694_v51 = vsub.s32 5, %v2551_v54  ;;  %v1700_v52 = vsub.s32 6, %v2551_v54 }
 0x7fd   :  { %1729 = dma.vmem_to_hbm [thread:$0]  %s1724_s9, 1024, %s2627_s8, [#allocation5], %s2227_s1, %s2227_s1, %s2228_s11  }
 0x7fe   :  { %v1695_v53 = vrot.slane %v2557_v60, %v1694_v51  ;;  %v1701_v57 = vrot.slane %v2557_v60, %v1700_v52  ;;  %s2229_s8 = smov [#allocation2]  }
 0x7ff   :  { %s1711_s6 = sshll.u32 %s2229_s8, 4  ;;  %s1712_s6 = int_to_ptr.vmem [resolvable:$true] %s1711_s6 }
 0x800   :  { %s2200_s14 = scalar_lea.vmem %s1712_s6, 256  ;;  %p2205_p6 = scmp.lt.s32.totalorder %s1712_s6, %s1712_s6 }
 0x801   :  { %p2201_p5 = scmp.ne.s32.totalorder %s1712_s6, %s2200_s14  ;;  %p2206_p7 = scmp.lt.s32.totalorder %s2200_s14, %s2200_s14 }
 0x803   :  { %p2207_p8 = por %p2206_p7, %p2205_p6 }
 0x805   :  { %p2208_p9 = pnand %p2207_p8, %p2201_p5 }
 0x87f   :  { %v1666_v35 = vpop.xlane.xlu0 %1665 }
 0x880   :  { %v1670_v36 = vmul.f32 0.032258064, %v1666_v35 }
 0x882   :  { %2172 = vrsqrt.f32 %v1670_v36  ;;  %vm1674_vm8 = vcmp.eq.f32.partialorder %v1670_v36, inf  ;;  %v1677_v41 = vand.u32 2147483648, %v1670_v36  ;;  %vm1676_vm9 = vcmp.eq.f32.partialorder %v1670_v36, 0.0 }
 0x883   :  { %v1669_v37 = vpop.xlane.xlu1 %1668 }
 0x884   :  { %v1671_v38 = vmul.f32 0.032258064, %v1669_v37 }
 0x886   :  { %2174 = vrsqrt.f32 %v1671_v38  ;;  %vm1681_vm10 = vcmp.eq.f32.partialorder %v1671_v38, inf  ;;  %v1684_v47 = vand.u32 2147483648, %v1671_v38  ;;  %vm1683_vm11 = vcmp.eq.f32.partialorder %v1671_v38, 0.0 }
 0x88f   :  { %v2173_v39 = vpop.eup %2172 }
 0x890   :  { %v1673_v40 = vmul.f32 %v2173_v39, %v1670_v36 }
 0x892   :  { %v1675_v42 = vsel %vm1674_vm8, %v1670_v36, %v1673_v40 }
 0x893   :  { %v2175_v43 = vpop.eup %2174  ;;  %v1678_v44 = vsel %vm1676_vm9, %v1677_v41, %v1675_v42 }
 0x894   :  { %v1686_v45 = vadd.f32 0.001, %v1678_v44  ;;  %v1680_v46 = vmul.f32 %v2175_v43, %v1671_v38 }
 0x896   :  { %2176 = vrcp.f32 %v1686_v45  ;;  %v1682_v48 = vsel %vm1681_vm10, %v1671_v38, %v1680_v46 }
 0x897   :  { %v1685_v49 = vsel %vm1683_vm11, %v1684_v47, %v1682_v48 }
 0x898   :  { %v1687_v50 = vadd.f32 0.001, %v1685_v49 }
 0x89a   :  { %2178 = vrcp.f32 %v1687_v50 }
 0x8a3   :  { %v2177_v55 = vpop.eup %2176 }
 0x8a4   :  { %v1689_v56 = vmul.f32 %v2177_v55, %v1660_v5 }
 0x8a6   :  { %v1696_v58 = vmul.f32 %v1695_v53, %v1689_v56 }
 0x8a7   :  { %v2179_v59 = vpop.eup %2178 }
 0x8a8   :  { %v1691_v61 = vmul.f32 %v2179_v59, %v1661_v31  ;;  %v1702_v62 = vadd.f32 %v1701_v57, %v1696_v58 }
 0x8aa   :  { %v1697_v63 = vmul.f32 %v1695_v53, %v1691_v61  ;;  %1704 = vst.msk [vmem:[#allocation2] sm:$0xff] %vm97_vm1, %v1702_v62 }
 0x8ac   :  { %v1703_v0 = vadd.f32 %v1701_v57, %v1697_v63 }
 0x8ae   :  { %1705 = vst.msk [vmem:[#allocation2 + $0x8] sm:$0xff] %vm97_vm1, %v1703_v0 }
 0x8af   :  { %2211 = shalt.err (!%p2208_p9)
}
 0x8b0   :  { %1717 = dma.vmem_to_hbm [thread:$0]  %s1712_s6, 256, %s2626_s7, [#allocation3], %s2227_s1, %s2227_s1, %s2228_s11  }
 0x8b1   :  { %2220 = dma.done.wait [#allocation3], 256  }
 0x8b2   :  { %2221 = vsyncadd [#allocation3], 4294967040 }
 0x8b3   :  { %2222 = dma.done.wait [#allocation5], 1024  }
 0x8b4   :  { %2223 = vsyncadd [#allocation5], 4294966272 }
 0x8b5   :  { %1736 = vsyncpa [#allocation3], 1 }
 0x8b6   :  { %1737 = vsyncpa [#allocation5], 1 }

</bundles_post_ra>
